<compile_context>
chip_gen: v7x
topology: tpu7x:2x2x1
jax: 0.10.0
libtpu: 0.0.40
codegen_flags: <defaults>
</compile_context>

<pallas_src>
import jax
import jax.numpy as jnp
from jax.experimental import pallas as pl
from jax.experimental.pallas import tpu as pltpu

INPUT_SIZE = 220
HIDDEN_DIM = 64
OUTPUT_SIZE = 90


def _fc_kernel(x_ref, w1_ref, b1_ref, w2_ref, b2_ref, w3_ref, b3_ref,
               w4_ref, b4_ref, o_ref):
    # Hot path: 4 MXU matmuls + VPU ReLUs on the current batch tile.
    x = x_ref[...]
    h = jnp.dot(x, w1_ref[...], preferred_element_type=jnp.float32) + b1_ref[...]
    h = jnp.maximum(h, 0.0)
    h = jnp.dot(h, w2_ref[...], preferred_element_type=jnp.float32) + b2_ref[...]
    h = jnp.maximum(h, 0.0)
    h = jnp.dot(h, w3_ref[...], preferred_element_type=jnp.float32) + b3_ref[...]
    h = jnp.maximum(h, 0.0)
    o_ref[...] = (jnp.dot(h, w4_ref[...], preferred_element_type=jnp.float32)
                  + b4_ref[...])


def fc_forward(x, params, *, batch_tile=512):
    """x: any shape (B, ...) whose trailing dims flatten to 220."""
    B = x.shape[0]
    x2d = x.reshape(B, -1).astype(jnp.float32)
    assert x2d.shape[1] == INPUT_SIZE, x2d.shape

    # Tile sizing:
    #  * big tiles (>= 256) amortize per-step pipeline overhead and fill MXU M
    #  * cap at ceil(B/2) so the parallel batch axis has >= 2 grid steps when
    #    possible (v7x: 2 TensorCores per chip)
    #  * multiple of 8 for sublane alignment; for tiny B use the full array
    #    (block_shape == array dims is always legal)
    if B <= 8:
        bt = B
    else:
        bt = min(batch_tile, pl.cdiv(B, 2))
        bt = max(8, ((bt + 7) // 8) * 8)

    w1, b1, w2, b2, w3, b3, w4, b4 = params

    def full_spec(shape):
        # whole (small) weight / bias lives in VMEM for every grid step
        return pl.BlockSpec(shape, lambda i: (0, 0))

    # No jnp.pad of x: ragged last block is handled by Pallas (OOB reads are
    # harmless per-row garbage, OOB writes are discarded).
    grid = (pl.cdiv(B, bt),)

    out = pl.pallas_call(
        _fc_kernel,
        out_shape=jax.ShapeDtypeStruct((B, OUTPUT_SIZE), jnp.float32),
        grid_spec=pl.GridSpec(
            grid=grid,
            in_specs=[
                pl.BlockSpec((bt, INPUT_SIZE), lambda i: (i, 0)),  # x tile
                full_spec(w1.shape), full_spec(b1.shape),
                full_spec(w2.shape), full_spec(b2.shape),
                full_spec(w3.shape), full_spec(b3.shape),
                full_spec(w4.shape), full_spec(b4.shape),
            ],
            out_specs=pl.BlockSpec((bt, OUTPUT_SIZE), lambda i: (i, 0)),
        ),
        compiler_params=pltpu.CompilerParams(
            dimension_semantics=("parallel",),
            # explicit headroom; safe on v7x's 64 MiB physical VMEM and
            # plenty for double-buffered x/out tiles + resident weights
            vmem_limit_bytes=32 * 1024 * 1024,
        ),
    )(x2d, w1, b1, w2, b2, w3, b3, w4, b4)

    # .view(-1, 10, 9)
    return out.reshape(-1, 10, 9)


def init_params(key):
    """PyTorch Linear(in, out) weight is (out, in); we store the transpose
    (in, out) so the kernel computes x @ W.  Init ~ U(-1/sqrt(in), 1/sqrt(in))
    like torch's default."""
    dims = [(INPUT_SIZE, HIDDEN_DIM),
            (HIDDEN_DIM, HIDDEN_DIM),
            (HIDDEN_DIM, HIDDEN_DIM),
            (HIDDEN_DIM, OUTPUT_SIZE)]
    params = []
    for (fan_in, fan_out) in dims:
        key, kw, kb = jax.random.split(key, 3)
        bound = 1.0 / jnp.sqrt(jnp.float32(fan_in))
        w = jax.random.uniform(kw, (fan_in, fan_out), jnp.float32, -bound, bound)
        b = jax.random.uniform(kb, (1, fan_out), jnp.float32, -bound, bound)
        params += [w, b]
    return tuple(params)


def _reference(x2d, params):
    w1, b1, w2, b2, w3, b3, w4, b4 = params
    h = jnp.maximum(x2d @ w1 + b1, 0)
    h = jnp.maximum(h @ w2 + b2, 0)
    h = jnp.maximum(h @ w3 + b3, 0)
    return (h @ w4 + b4).reshape(-1, 10, 9)


if __name__ == "__main__":
    key = jax.random.PRNGKey(0)
    kx, kx2, kp = jax.random.split(key, 3)
    params = init_params(kp)

    # Small primary check (B=2): full-array single block.
    B = 2
    x = jax.random.normal(kx, (B, INPUT_SIZE), jnp.float32)
    out = jax.block_until_ready(fc_forward(x, params))
    assert out.shape == (B, 10, 9), out.shape
    assert jnp.allclose(out, _reference(x, params), atol=1e-5, rtol=1e-5)

    # Secondary check exercising multi-step grid + ragged last tile (B=50).
    B2 = 50
    x2 = jax.random.normal(kx2, (B2, INPUT_SIZE), jnp.float32)
    out2 = jax.block_until_ready(fc_forward(x2, params))
    assert out2.shape == (B2, 10, 9), out2.shape
    assert jnp.allclose(out2, _reference(x2, params), atol=1e-5, rtol=1e-5)

    print("KERNEL_OK")
</pallas_src>

<mosaic_0001>
module attributes {stable_mosaic.version = 11 : i64} {
  func.func @_fc_kernel(%arg0: i32, %arg1: memref<2x220xf32, #tpu.memory_space<vmem>>, %arg2: memref<220x64xf32, #tpu.memory_space<vmem>>, %arg3: memref<1x64xf32, #tpu.memory_space<vmem>>, %arg4: memref<64x64xf32, #tpu.memory_space<vmem>>, %arg5: memref<1x64xf32, #tpu.memory_space<vmem>>, %arg6: memref<64x64xf32, #tpu.memory_space<vmem>>, %arg7: memref<1x64xf32, #tpu.memory_space<vmem>>, %arg8: memref<64x90xf32, #tpu.memory_space<vmem>>, %arg9: memref<1x90xf32, #tpu.memory_space<vmem>>, %arg10: memref<2x90xf32, #tpu.memory_space<vmem>>) attributes {dimension_semantics = [#tpu.dimension_semantics<parallel>], iteration_bounds = array<i64: 1>, scalar_prefetch = 0 : i64, scratch_operands = 0 : i64, tpu.core_type = #tpu.core_type<tc>, window_params = [{transform_indices = @transform_0, window_bounds = array<i64: 2, 220>}, {pipeline_mode = #tpu.pipeline_mode<synchronous>, transform_indices = @transform_1, window_bounds = array<i64: 220, 64>}, {pipeline_mode = #tpu.pipeline_mode<synchronous>, transform_indices = @transform_2, window_bounds = array<i64: 1, 64>}, {pipeline_mode = #tpu.pipeline_mode<synchronous>, transform_indices = @transform_3, window_bounds = array<i64: 64, 64>}, {pipeline_mode = #tpu.pipeline_mode<synchronous>, transform_indices = @transform_4, window_bounds = array<i64: 1, 64>}, {pipeline_mode = #tpu.pipeline_mode<synchronous>, transform_indices = @transform_5, window_bounds = array<i64: 64, 64>}, {pipeline_mode = #tpu.pipeline_mode<synchronous>, transform_indices = @transform_6, window_bounds = array<i64: 1, 64>}, {pipeline_mode = #tpu.pipeline_mode<synchronous>, transform_indices = @transform_7, window_bounds = array<i64: 64, 90>}, {pipeline_mode = #tpu.pipeline_mode<synchronous>, transform_indices = @transform_8, window_bounds = array<i64: 1, 90>}, {transform_indices = @transform_9, window_bounds = array<i64: 2, 90>}]} {
    %c0 = arith.constant 0 : index
    %c0_0 = arith.constant 0 : index
    %0 = vector.load %arg1[%c0, %c0_0] : memref<2x220xf32, #tpu.memory_space<vmem>>, vector<2x220xf32>
    %c0_1 = arith.constant 0 : index
    %c0_2 = arith.constant 0 : index
    %1 = vector.load %arg2[%c0_1, %c0_2] : memref<220x64xf32, #tpu.memory_space<vmem>>, vector<220x64xf32>
    %cst = arith.constant dense<0.000000e+00> : vector<2x64xf32>
    %2 = tpu.matmul %0, %1, %cst {dimension_numbers = #tpu.dot_dimension_numbers<[1], [0], [0], [1], [0, 0, 1, 1], [], []>} : vector<2x220xf32>, vector<220x64xf32>, vector<2x64xf32> -> vector<2x64xf32>
    %c0_3 = arith.constant 0 : index
    %c0_4 = arith.constant 0 : index
    %3 = vector.load %arg3[%c0_3, %c0_4] : memref<1x64xf32, #tpu.memory_space<vmem>>, vector<1x64xf32>
    %4 = vector.broadcast %3 : vector<1x64xf32> to vector<2x64xf32>
    %5 = arith.addf %2, %4 : vector<2x64xf32>
    %cst_5 = arith.constant 0.000000e+00 : f32
    %6 = vector.broadcast %cst_5 : f32 to vector<2x64xf32>
    %7 = arith.maximumf %5, %6 : vector<2x64xf32>
    %c0_6 = arith.constant 0 : index
    %c0_7 = arith.constant 0 : index
    %8 = vector.load %arg4[%c0_6, %c0_7] : memref<64x64xf32, #tpu.memory_space<vmem>>, vector<64x64xf32>
    %cst_8 = arith.constant dense<0.000000e+00> : vector<2x64xf32>
    %9 = tpu.matmul %7, %8, %cst_8 {dimension_numbers = #tpu.dot_dimension_numbers<[1], [0], [0], [1], [0, 0, 1, 1], [], []>} : vector<2x64xf32>, vector<64x64xf32>, vector<2x64xf32> -> vector<2x64xf32>
    %c0_9 = arith.constant 0 : index
    %c0_10 = arith.constant 0 : index
    %10 = vector.load %arg5[%c0_9, %c0_10] : memref<1x64xf32, #tpu.memory_space<vmem>>, vector<1x64xf32>
    %11 = vector.broadcast %10 : vector<1x64xf32> to vector<2x64xf32>
    %12 = arith.addf %9, %11 : vector<2x64xf32>
    %cst_11 = arith.constant 0.000000e+00 : f32
    %13 = vector.broadcast %cst_11 : f32 to vector<2x64xf32>
    %14 = arith.maximumf %12, %13 : vector<2x64xf32>
    %c0_12 = arith.constant 0 : index
    %c0_13 = arith.constant 0 : index
    %15 = vector.load %arg6[%c0_12, %c0_13] : memref<64x64xf32, #tpu.memory_space<vmem>>, vector<64x64xf32>
    %cst_14 = arith.constant dense<0.000000e+00> : vector<2x64xf32>
    %16 = tpu.matmul %14, %15, %cst_14 {dimension_numbers = #tpu.dot_dimension_numbers<[1], [0], [0], [1], [0, 0, 1, 1], [], []>} : vector<2x64xf32>, vector<64x64xf32>, vector<2x64xf32> -> vector<2x64xf32>
    %c0_15 = arith.constant 0 : index
    %c0_16 = arith.constant 0 : index
    %17 = vector.load %arg7[%c0_15, %c0_16] : memref<1x64xf32, #tpu.memory_space<vmem>>, vector<1x64xf32>
    %18 = vector.broadcast %17 : vector<1x64xf32> to vector<2x64xf32>
    %19 = arith.addf %16, %18 : vector<2x64xf32>
    %cst_17 = arith.constant 0.000000e+00 : f32
    %20 = vector.broadcast %cst_17 : f32 to vector<2x64xf32>
    %21 = arith.maximumf %19, %20 : vector<2x64xf32>
    %c0_18 = arith.constant 0 : index
    %c0_19 = arith.constant 0 : index
    %22 = vector.load %arg8[%c0_18, %c0_19] : memref<64x90xf32, #tpu.memory_space<vmem>>, vector<64x90xf32>
    %cst_20 = arith.constant dense<0.000000e+00> : vector<2x90xf32>
    %23 = tpu.matmul %21, %22, %cst_20 {dimension_numbers = #tpu.dot_dimension_numbers<[1], [0], [0], [1], [0, 0, 1, 1], [], []>} : vector<2x64xf32>, vector<64x90xf32>, vector<2x90xf32> -> vector<2x90xf32>
    %c0_21 = arith.constant 0 : index
    %c0_22 = arith.constant 0 : index
    %24 = vector.load %arg9[%c0_21, %c0_22] : memref<1x90xf32, #tpu.memory_space<vmem>>, vector<1x90xf32>
    %25 = vector.broadcast %24 : vector<1x90xf32> to vector<2x90xf32>
    %26 = arith.addf %23, %25 : vector<2x90xf32>
    %c0_23 = arith.constant 0 : index
    %c0_24 = arith.constant 0 : index
    %27 = vector.load %arg10[%c0_23, %c0_24] : memref<2x90xf32, #tpu.memory_space<vmem>>, vector<2x90xf32>
    tpu.vector_store %arg10[%c0_23, %c0_24], %26 {strides = array<i32>} : memref<2x90xf32, #tpu.memory_space<vmem>>, vector<2x90xf32>,
    return
  }
  func.func @transform_0(%arg0: i32) -> (i32, i32) {
    %c0_i32 = arith.constant 0 : i32
    %c0_i32_0 = arith.constant 0 : i32
    return %arg0, %c0_i32 : i32, i32
  }
  func.func @transform_1(%arg0: i32) -> (i32, i32) {
    %c0_i32 = arith.constant 0 : i32
    %c0_i32_0 = arith.constant 0 : i32
    %c0_i32_1 = arith.constant 0 : i32
    return %c0_i32, %c0_i32_0 : i32, i32
  }
  func.func @transform_2(%arg0: i32) -> (i32, i32) {
    %c0_i32 = arith.constant 0 : i32
    %c0_i32_0 = arith.constant 0 : i32
    %c0_i32_1 = arith.constant 0 : i32
    return %c0_i32, %c0_i32_0 : i32, i32
  }
  func.func @transform_3(%arg0: i32) -> (i32, i32) {
    %c0_i32 = arith.constant 0 : i32
    %c0_i32_0 = arith.constant 0 : i32
    %c0_i32_1 = arith.constant 0 : i32
    return %c0_i32, %c0_i32_0 : i32, i32
  }
  func.func @transform_4(%arg0: i32) -> (i32, i32) {
    %c0_i32 = arith.constant 0 : i32
    %c0_i32_0 = arith.constant 0 : i32
    %c0_i32_1 = arith.constant 0 : i32
    return %c0_i32, %c0_i32_0 : i32, i32
  }
  func.func @transform_5(%arg0: i32) -> (i32, i32) {
    %c0_i32 = arith.constant 0 : i32
    %c0_i32_0 = arith.constant 0 : i32
    %c0_i32_1 = arith.constant 0 : i32
    return %c0_i32, %c0_i32_0 : i32, i32
  }
  func.func @transform_6(%arg0: i32) -> (i32, i32) {
    %c0_i32 = arith.constant 0 : i32
    %c0_i32_0 = arith.constant 0 : i32
    %c0_i32_1 = arith.constant 0 : i32
    return %c0_i32, %c0_i32_0 : i32, i32
  }
  func.func @transform_7(%arg0: i32) -> (i32, i32) {
    %c0_i32 = arith.constant 0 : i32
    %c0_i32_0 = arith.constant 0 : i32
    %c0_i32_1 = arith.constant 0 : i32
    return %c0_i32, %c0_i32_0 : i32, i32
  }
  func.func @transform_8(%arg0: i32) -> (i32, i32) {
    %c0_i32 = arith.constant 0 : i32
    %c0_i32_0 = arith.constant 0 : i32
    %c0_i32_1 = arith.constant 0 : i32
    return %c0_i32, %c0_i32_0 : i32, i32
  }
  func.func @transform_9(%arg0: i32) -> (i32, i32) {
    %c0_i32 = arith.constant 0 : i32
    %c0_i32_0 = arith.constant 0 : i32
    return %arg0, %c0_i32 : i32, i32
  }
}

</mosaic_0001>

<bundles_post_ra>
// kernel: tpu_custom_call.1
= control target key start
LH: loop header
LB: loop body
LE: loop exit
PB: predicated region body
PF: predicated region fallthrough
CT: control target
= control target key end

     0   :  { %v642_v3 = vmov 0.0|0.0   ;;  %vm79_vm0 = vcmask 752640   ;;  %s917_s0 = inlined_call_operand.vmem [shape: f32[2,220], index: 0, kind: input, shape index: {}]   ;;  %s918_s1 = inlined_call_operand.vmem [shape: f32[220,64], index: 1, kind: input, shape index: {}]   ;;  %s919_s2 = inlined_call_operand.vmem [shape: f32[1,64], index: 2, kind: input, shape index: {}]   ;;  %s920_s3 = inlined_call_operand.vmem [shape: f32[64,64], index: 3, kind: input, shape index: {}]   ;;  %s921_s4 = inlined_call_operand.vmem [shape: f32[1,64], index: 4, kind: input, shape index: {}]   ;;  %s922_s5 = inlined_call_operand.vmem [shape: f32[64,64], index: 5, kind: input, shape index: {}]   ;;  %s923_s6 = inlined_call_operand.vmem [shape: f32[1,64], index: 6, kind: input, shape index: {}]   ;;  %s924_s7 = inlined_call_operand.vmem [shape: f32[64,90], index: 7, kind: input, shape index: {}]   ;;  %s925_s8 = inlined_call_operand.vmem [shape: f32[1,90], index: 8, kind: input, shape index: {}]   ;;  %s926_s9 = inlined_call_operand.hbm [shape: f32[2,90], index: 9, kind: output, shape index: {}]  }
   0x1   :  { %v34_v0 = vld [vmem:[%s918_s1] sm:$0xff]  ;;  %v35_v1 = vld [vmem:[%s918_s1 + $0x8] sm:$0xff]  ;;  %v36_v2 = vld [vmem:[%s918_s1 + $0x10] sm:$0xff]  ;;  %534 = vmatprep.subr.bf16.mxu0 %v642_v3  ;;  %577 = vmatprep.subr.bf16.mxu1 %v642_v3 }
   0x2   :  { %v535_v4 = vpack.c.bf16 %v35_v1, %v34_v0  ;;  %v37_v5 = vld [vmem:[%s918_s1 + $0x18] sm:$0xff]  ;;  %v38_v7 = vld [vmem:[%s918_s1 + $0x20] sm:$0xff]  ;;  %v39_v8 = vld [vmem:[%s918_s1 + $0x28] sm:$0xff] }
   0x3   :  { %v538_v6 = vpack.c.bf16 %v37_v5, %v36_v2  ;;  %v541_v9 = vpack.c.bf16 %v39_v8, %v38_v7  ;;  %v40_v10 = vld [vmem:[%s918_s1 + $0x30] sm:$0xff]  ;;  %v41_v11 = vld [vmem:[%s918_s1 + $0x38] sm:$0xff]  ;;  %v728_v12 = vld.sshfl [vmem:[%s917_s0] sm:$0x33 pattern:$0x76325410] }
   0x4   :  { %536 = vmatpush1.bf16.msra.mxu0 %v535_v4  ;;  %v77_v13 = vcombine.high %v728_v12, %v728_v12  ;;  %v157_v14 = vld [vmem:[%s920_s3] sm:$0xff]  ;;  %v158_v15 = vld [vmem:[%s920_s3 + $0x8] sm:$0xff]  ;;  %v159_v16 = vld [vmem:[%s920_s3 + $0x10] sm:$0xff]  ;;  %v544_v17 = vpack.c.bf16 %v41_v11, %v40_v10 }
   0x5   :  { %537 = vmatprep.subr.bf16.mxu0 %v642_v3  ;;  %v578_v18 = vpack.c.bf16 %v158_v15, %v157_v14  ;;  %v160_v19 = vld [vmem:[%s920_s3 + $0x18] sm:$0xff]  ;;  %v42_v20 = vld [vmem:[%s918_s1 + $0x40] sm:$0xff]  ;;  %v43_v21 = vld [vmem:[%s918_s1 + $0x48] sm:$0xff] }
   0x6   :  { %443 = vmatprep.mubr.msk.f32.mxu0 %vm79_vm0, %v77_v13 }
   0x8   :  { %539 = vmatpush1.bf16.msra.mxu0 %v538_v6 }
   0x9   :  { %540 = vmatprep.subr.bf16.mxu0 %v642_v3 }
   0xc   :  { %542 = vmatpush1.bf16.msra.mxu0 %v541_v9 }
   0xd   :  { %543 = vmatprep.subr.bf16.mxu0 %v642_v3 }
   0xe   :  { %14 = vsyncpa [#allocation3], 0  ;;  %579 = vmatpush3.bf16.msra.mxu1 %v578_v18  ;;  %v581_v22 = vpack.c.bf16 %v160_v19, %v159_v16  ;;  %v161_v23 = vld [vmem:[%s920_s3 + $0x20] sm:$0xff]  ;;  %v162_v24 = vld [vmem:[%s920_s3 + $0x28] sm:$0xff]  ;;  %v547_v25 = vpack.c.bf16 %v43_v21, %v42_v20  ;;  %vm82_vm1 = vcmask 1043456   ;;  %vm643_vm2 = vmmov 1  }
   0xf   :  { %580 = vmatprep.subr.bf16.mxu1 %v642_v3  ;;  %v44_v26 = vld [vmem:[%s918_s1 + $0x50] sm:$0xff]  ;;  %v45_v27 = vld [vmem:[%s918_s1 + $0x58] sm:$0xff]  ;;  %v584_v28 = vpack.c.bf16 %v162_v24, %v161_v23  ;;  %v46_v30 = vld [vmem:[%s918_s1 + $0x60] sm:$0xff]  ;;  %vm644_vm4 = vmmov 0   ;;  %v645_v57 = vmov 0.0   ;;  %vm172_vm5 = vcmask 523264  }
  0x10   :  { %545 = vmatpush1.bf16.msra.mxu0 %v544_v17  ;;  %v550_v29 = vpack.c.bf16 %v45_v27, %v44_v26  ;;  %v47_v31 = vld [vmem:[%s918_s1 + $0x68] sm:$0xff]  ;;  %v48_v33 = vld [vmem:[%s918_s1 + $0x70] sm:$0xff]  ;;  %v49_v34 = vld [vmem:[%s918_s1 + $0x78] sm:$0xff]  ;;  %493 = vmatprep.mubr.msk.f32.mxu1 %vm644_vm4, %v645_v57  ;;  %s646_s27 = smov [#allocation2]   ;;  %vm424_vm6 = vcmask 730112  }
  0x11   :  { %546 = vmatprep.subr.bf16.mxu0 %v642_v3  ;;  %v553_v32 = vpack.c.bf16 %v47_v31, %v46_v30  ;;  %v556_v35 = vpack.c.bf16 %v49_v34, %v48_v33  ;;  %v50_v36 = vld [vmem:[%s918_s1 + $0x80] sm:$0xff]  ;;  %v51_v37 = vld [vmem:[%s918_s1 + $0x88] sm:$0xff]  ;;  %v52_v39 = vld [vmem:[%s918_s1 + $0x90] sm:$0xff]  ;;  %s432_s28 = sshll.u32 %s646_s27, 4  ;;  %s433_s28 = int_to_ptr.vmem [resolvable:$true] %s432_s28 }
  0x12   :  { %582 = vmatpush3.bf16.msra.mxu1 %v581_v22  ;;  %v559_v38 = vpack.c.bf16 %v51_v37, %v50_v36  ;;  %v53_v40 = vld [vmem:[%s918_s1 + $0x98] sm:$0xff]  ;;  %v54_v42 = vld [vmem:[%s918_s1 + $0xa0] sm:$0xff]  ;;  %v55_v43 = vld [vmem:[%s918_s1 + $0xa8] sm:$0xff]  ;;  %p623_p1 = scmp.lt.s32.totalorder %s433_s28, %s433_s28 }
  0x13   :  { %583 = vmatprep.subr.bf16.mxu1 %v642_v3  ;;  %v562_v41 = vpack.c.bf16 %v53_v40, %v52_v39  ;;  %v565_v44 = vpack.c.bf16 %v55_v43, %v54_v42  ;;  %v56_v45 = vld [vmem:[%s918_s1 + $0xb0] sm:$0xff]  ;;  %v57_v46 = vld [vmem:[%s918_s1 + $0xb8] sm:$0xff]  ;;  %v58_v48 = vld [vmem:[%s918_s1 + $0xc0] sm:$0xff] }
  0x14   :  { %548 = vmatpush1.bf16.msra.mxu0 %v547_v25  ;;  %v568_v47 = vpack.c.bf16 %v57_v46, %v56_v45  ;;  %v59_v49 = vld [vmem:[%s918_s1 + $0xc8] sm:$0xff]  ;;  %v60_v51 = vld [vmem:[%s918_s1 + $0xd0] sm:$0xff]  ;;  %v61_v52 = vld [vmem:[%s918_s1 + $0xd8] sm:$0xf] }
  0x15   :  { %549 = vmatprep.subr.bf16.mxu0 %v642_v3  ;;  %v571_v50 = vpack.c.bf16 %v59_v49, %v58_v48  ;;  %v574_v53 = vpack.c.bf16 %v61_v52, %v60_v51  ;;  %vm575_vm3 = vmpackc.low %vm82_vm1, %vm643_vm2  ;;  %v163_v54 = vld [vmem:[%s920_s3 + $0x30] sm:$0xff]  ;;  %v164_v55 = vld [vmem:[%s920_s3 + $0x38] sm:$0xff] }
  0x16   :  { %585 = vmatpush3.bf16.msra.mxu1 %v584_v28  ;;  %v587_v56 = vpack.c.bf16 %v164_v55, %v163_v54  ;;  %v440_v58 = vld [vmem:[%s919_s2] ss:$0 sm:$0xff]  ;;  %v248_v60 = vld [vmem:[%s922_s5 + $0x8] sm:$0xff]  ;;  %v249_v2 = vld [vmem:[%s922_s5 + $0x10] sm:$0xff] }
  0x17   :  { %586 = vmatprep.subr.bf16.mxu1 %v642_v3  ;;  %v247_v59 = vld [vmem:[%s922_s5] sm:$0xff]  ;;  %v250_v4 = vld [vmem:[%s922_s5 + $0x18] sm:$0xff]  ;;  %v252_v7 = vld [vmem:[%s922_s5 + $0x28] sm:$0xff] }
  0x18   :  { %551 = vmatpush1.bf16.msra.mxu0 %v550_v29  ;;  %v590_v0 = vpack.c.bf16 %v248_v60, %v247_v59  ;;  %v593_v5 = vpack.c.bf16 %v250_v4, %v249_v2  ;;  %v251_v6 = vld [vmem:[%s922_s5 + $0x20] sm:$0xff]  ;;  %v253_v9 = vld [vmem:[%s922_s5 + $0x30] sm:$0xff]  ;;  %v254_v10 = vld [vmem:[%s922_s5 + $0x38] sm:$0xff] }
  0x19   :  { %552 = vmatprep.subr.bf16.mxu0 %v642_v3  ;;  %v596_v8 = vpack.c.bf16 %v252_v7, %v251_v6  ;;  %v599_v11 = vpack.c.bf16 %v254_v10, %v253_v9  ;;  %v336_v13 = vld [vmem:[%s924_s7] sm:$0xff]  ;;  %v337_v14 = vld [vmem:[%s924_s7 + $0x8] sm:$0xff]  ;;  %v338_v20 = vld [vmem:[%s924_s7 + $0x10] sm:$0xff] }
  0x1a   :  { %588 = vmatpush3.bf16.msra.mxu1 %v587_v56  ;;  %v602_v18 = vpack.c.bf16 %v337_v14, %v336_v13  ;;  %v339_v21 = vld [vmem:[%s924_s7 + $0x18] sm:$0xff]  ;;  %v340_v23 = vld [vmem:[%s924_s7 + $0x20] sm:$0xff]  ;;  %v341_v24 = vld [vmem:[%s924_s7 + $0x28] sm:$0xff] }
  0x1b   :  { %589 = vmatprep.subr.bf16.mxu1 %v642_v3  ;;  %v605_v22 = vpack.c.bf16 %v339_v21, %v338_v20  ;;  %v608_v25 = vpack.c.bf16 %v341_v24, %v340_v23  ;;  %v342_v26 = vld [vmem:[%s924_s7 + $0x30] sm:$0xff]  ;;  %v343_v27 = vld [vmem:[%s924_s7 + $0x38] sm:$0xff]  ;;  %v446_v29 = vld [vmem:[%s923_s6] ss:$0 sm:$0xff]  ;;  %s618_s7 = scalar_lea.vmem %s433_s28, 32 }
  0x1c   :  { %554 = vmatpush1.bf16.msra.mxu0 %v553_v32  ;;  %v611_v28 = vpack.c.bf16 %v343_v27, %v342_v26  ;;  %p619_p0 = scmp.ne.s32.totalorder %s433_s28, %s618_s7  ;;  %p624_p2 = scmp.lt.s32.totalorder %s618_s7, %s618_s7 }
  0x1d   :  { %555 = vmatprep.subr.bf16.mxu0 %v642_v3 }
  0x1e   :  { %p625_p3 = por %p624_p2, %p623_p1 }
  0x20   :  { %557 = vmatpush1.bf16.msra.mxu0 %v556_v35  ;;  %p626_p4 = pnand %p625_p3, %p619_p0 }
  0x21   :  { %558 = vmatprep.subr.bf16.mxu0 %v642_v3 }
  0x24   :  { %560 = vmatpush1.bf16.msra.mxu0 %v559_v38 }
  0x25   :  { %561 = vmatprep.subr.bf16.mxu0 %v642_v3 }
  0x28   :  { %563 = vmatpush1.bf16.msra.mxu0 %v562_v41 }
  0x29   :  { %564 = vmatprep.subr.bf16.mxu0 %v642_v3 }
  0x2c   :  { %566 = vmatpush1.bf16.msra.mxu0 %v565_v44 }
  0x2d   :  { %567 = vmatprep.subr.bf16.mxu0 %v642_v3 }
  0x30   :  { %569 = vmatpush1.bf16.msra.mxu0 %v568_v47 }
  0x31   :  { %570 = vmatprep.subr.bf16.mxu0 %v642_v3 }
  0x34   :  { %572 = vmatpush1.bf16.msra.mxu0 %v571_v50 }
  0x35   :  { %573 = vmatprep.subr.bf16.mxu0 %v642_v3 }
  0x38   :  { %576 = vmatpush1.bf16.msk.msra.mxu0 %vm575_vm3, %v574_v53 }
  0x3b   :  { %151 = vmatmul.mubr.f32.vlgmr.msra.gmra.mrb[0].mxu0 %v728_v12  ;;  %v444_v12 = vld [vmem:[%s921_s4] ss:$0 sm:$0xff] }
 0x10e   :  { %v152_v61 = vpop.f32.mrb[0].mxu0 }
 0x10f   :  { %v153_v62 = vadd.f32 %v440_v58, %v152_v61  ;;  %v154_v63 = vpop.f32.mrb[1].mxu0 }
 0x111   :  { %v156_v1 = vmax.f32 %v153_v62, 0.0 }
 0x113   :  { %494 = vmatmul.mubr.msk.f32.vlgmr.msra.gmra.mrb[0].mxu1 %vm172_vm5, %v156_v1 }
 0x114   :  { %591 = vmatpush3.bf16.msra.mxu1 %v590_v0  ;;  %512 = vmatprep.mubr.msk.f32.mxu1 %vm644_vm4, %v645_v57 }
 0x115   :  { %592 = vmatprep.subr.bf16.mxu1 %v642_v3 }
 0x118   :  { %594 = vmatpush3.bf16.msra.mxu1 %v593_v5 }
 0x119   :  { %595 = vmatprep.subr.bf16.mxu1 %v642_v3 }
 0x11c   :  { %597 = vmatpush3.bf16.msra.mxu1 %v596_v8 }
 0x11d   :  { %598 = vmatprep.subr.bf16.mxu1 %v642_v3 }
 0x120   :  { %600 = vmatpush3.bf16.msra.mxu1 %v599_v11 }
 0x121   :  { %601 = vmatprep.subr.bf16.mxu1 %v642_v3 }
 0x1e6   :  { %v242_v15 = vpop.f32.mrb[0].mxu1 }
 0x1e7   :  { %v243_v16 = vadd.f32 %v444_v12, %v242_v15  ;;  %v495_v17 = vpop.f32.mrb[1].mxu1 }
 0x1e9   :  { %v246_v19 = vmax.f32 %v243_v16, 0.0 }
 0x1eb   :  { %513 = vmatmul.mubr.msk.f32.vlgmr.msra.gmra.mrb[2].mxu1 %vm172_vm5, %v246_v19 }
 0x1ec   :  { %603 = vmatpush3.bf16.msra.mxu1 %v602_v18  ;;  %531 = vmatprep.mubr.msk.f32.mxu1 %vm644_vm4, %v645_v57 }
 0x1ed   :  { %604 = vmatprep.subr.bf16.mxu1 %v642_v3 }
 0x1f0   :  { %606 = vmatpush3.bf16.msra.mxu1 %v605_v22 }
 0x1f1   :  { %607 = vmatprep.subr.bf16.mxu1 %v642_v3 }
 0x1f4   :  { %609 = vmatpush3.bf16.msra.mxu1 %v608_v25 }
 0x1f5   :  { %610 = vmatprep.subr.bf16.mxu1 %v642_v3  ;;  %v448_v3 = vld [vmem:[%s925_s8] ss:$0 sm:$0xff] }
 0x1f8   :  { %612 = vmatpush3.bf16.msra.mxu1 %v611_v28 }
 0x2be   :  { %v331_v30 = vpop.f32.mrb[2].mxu1 }
 0x2bf   :  { %v332_v31 = vadd.f32 %v446_v29, %v331_v30  ;;  %v514_v32 = vpop.f32.mrb[3].mxu1 }
 0x2c1   :  { %v335_v33 = vmax.f32 %v332_v31, 0.0 }
 0x2c3   :  { %532 = vmatmul.mubr.msk.f32.vlgmr.msra.gmra.mrb[4].mxu1 %vm172_vm5, %v335_v33 }
 0x396   :  { %v420_v34 = vpop.f32.mrb[4].mxu1 }
 0x397   :  { %v421_v35 = vadd.f32 %v448_v3, %v420_v34  ;;  %v533_v36 = vpop.f32.mrb[5].mxu1 }
 0x399   :  { %425 = vst.msk [vmem:[#allocation2] sm:$0x3] %vm424_vm6, %v421_v35 }
 0x39a   :  { %629 = shalt.err (!%p626_p4)
}
 0x39b   :  { %s630_s30 = scalar_lea.hbm %s926_s9, 32 }
 0x39c   :  { %p631_p5 = scmp.ne.s32.totalorder %s926_s9, %s630_s30  ;;  %p634_p6 = scmp.lt.u32.totalorder %s630_s30, %s926_s9 }
 0x39e   :  { %p636_p7 = pnand %p634_p6, %p631_p5 }
 0x3a0   :  { %639 = shalt.err (!%p636_p7)
}
 0x3a1   :  { %435 = dma.vmem_to_hbm [thread:$0]  %s433_s28, 32, %s926_s9, [#allocation3]  }
 0x3a2   :  { %640 = dma.done.wait [#allocation3], 32  }
 0x3a3   :  { %641 = vsyncadd [#allocation3], 4294967264 }
 0x3a4   :  { %439 = vsyncpa [#allocation3], 1 }

</bundles_post_ra>
